<compile_context>
chip_gen: v5e
topology: v5e:2x2
jax: 0.10.0
libtpu: 0.0.40
codegen_flags: <defaults>
</compile_context>

<pallas_src>
import functools

import jax
import jax.numpy as jnp
from jax.experimental import pallas as pl
from jax.experimental.pallas import tpu as pltpu

N_FEATS = 4
EXPANSION = 4
RES_SCALE = 0.1
KH = KW = 3


# ---------------------------------------------------------------------------
# Kernel
# ---------------------------------------------------------------------------
def resblock_stack_kernel(x_ref, w1_ref, b1_ref, w2_ref, b2_ref, out_ref, *, H, W):
    """One grid step: Nb images x C channels packed on sublanes, H*W on lanes.

    x_ref/out_ref : (G,  H*W)           G  = Nb*C
    w1_ref        : (L, 3, 3*Gm, G)     Gm = Nb*Cmid ; dim1 = kw tap (-1,0,+1)
    b1_ref        : (L, Gm, 1)
    w2_ref        : (L, 3, 3*G, Gm)     pre-scaled by res_scale
    b2_ref        : (L, G, 1)           pre-scaled by res_scale
    """
    HW = H * W
    G = x_ref.shape[0]
    Gm = b1_ref.shape[1]
    n_blocks = w1_ref.shape[0]

    # Hoisted once: lane masks for the first / last column of every image row.
    col = jax.lax.broadcasted_iota(jnp.int32, (1, HW), 1) % W
    first_col = col == 0
    last_col = col == (W - 1)

    def csh(v, k):
        # content shift along lanes: out[..., i] = v[..., (i + k) % HW]
        return pltpu.roll(v, (-k) % HW, axis=1)

    def conv3x3(x, wm, w0, wp, bias, cout):
        # W-direction circular taps on the input: a flat +-1 roll wraps across
        # row boundaries, so the boundary column is fixed with a select.
        xm = jnp.where(first_col, csh(x, W - 1), csh(x, -1))    # tap dw = -1
        xp = jnp.where(last_col, csh(x, -(W - 1)), csh(x, 1))   # tap dw = +1
        # Three accumulated matmuls (no im2col concat); rows of z are stacked
        # by dh in {-1, 0, +1}.
        z = (jnp.dot(wm, xm, preferred_element_type=jnp.float32)
             + jnp.dot(w0, x, preferred_element_type=jnp.float32)
             + jnp.dot(wp, xp, preferred_element_type=jnp.float32))
        # H-direction circular taps folded into the (small) matmul OUTPUT:
        # exact flat rolls by +-W applied after the channel mix.
        return (csh(z[0:cout], -W) + z[cout:2 * cout]
                + csh(z[2 * cout:3 * cout], W) + bias)

    def block_step(l, x):
        w1 = w1_ref[l]                                    # (3, 3*Gm, G)
        w2 = w2_ref[l]                                    # (3, 3*G, Gm)
        h = conv3x3(x, w1[0], w1[1], w1[2], b1_ref[l], Gm)
        h = jnp.maximum(h, 0.0)                           # ReLU
        y = conv3x3(h, w2[0], w2[1], w2[2], b2_ref[l], G)
        return x + y                    # conv2 already pre-scaled by res_scale

    x = x_ref[...].astype(jnp.float32)
    if n_blocks <= 4:
        for l in range(n_blocks):       # static unroll for small stacks
            x = block_step(l, x)
    else:                               # bounded live ranges for large stacks
        x = jax.lax.fori_loop(0, n_blocks, block_step, x)
    out_ref[...] = x.astype(out_ref.dtype)


# ---------------------------------------------------------------------------
# Weight prep / wrapper
# ---------------------------------------------------------------------------
def _weight_norm(v, g):
    # torch weight_norm (dim=0): weight = g * v / ||v||, norm over (in, kh, kw)
    norm = jnp.sqrt(jnp.sum(v * v, axis=(1, 2, 3), keepdims=True))
    return g.reshape(-1, 1, 1, 1) * v / norm


def _pack_weight(w_oihw, nb):
    """(Cout, Cin, 3, 3) -> (3, 3*nb*Cout, nb*Cin), block-diag over nb images.

    Output index [dw, dh*(nb*Cout) + j*Cout + co, j*Cin + ci] = w[co, ci, dh, dw];
    off-diagonal image blocks are zero so sublane-packed images never mix.
    """
    cout, cin, _, _ = w_oihw.shape
    eye = jnp.eye(nb, dtype=w_oihw.dtype)
    a = jnp.transpose(w_oihw, (3, 2, 0, 1))                  # (dw, dh, co, ci)
    full = jnp.einsum('drab,jk->drjakb', a, eye)             # (3,3,nb,co,nb,ci)
    return full.reshape(3, 3 * nb * cout, nb * cin)


def _pick_group(n, c, hw, max_group=None):
    """Images per grid step: largest divisor of n with (nb*c) % 8 == 0 that
    fits a modest VMEM budget; falls back to the whole batch (always legal
    since the block dim then equals the full array dim)."""
    per_image = 4 * hw * 8 * (c + c * EXPANSION)   # rough activation+temp bytes
    cap = max(1, (8 * 2**20) // max(per_image, 1))
    cap = min(cap, n)
    if max_group is not None:
        cap = min(cap, max_group)
    for nb in range(cap, 0, -1):
        if n % nb == 0 and (nb * c) % 8 == 0:
            return nb
    return n


def _vmem_tile_bytes(shape, itemsize=4):
    # VMEM footprint with (8, 128) tile padding on the two minor dims.
    s = list(shape)
    s[-1] = -(-s[-1] // 128) * 128
    if len(s) >= 2:
        s[-2] = -(-s[-2] // 8) * 8
    total = itemsize
    for d in s:
        total *= d
    return total


def resblock_stack_forward(x_nchw, block_params, max_images_per_step=None):
    """Run a stack of ResBlocks fused into a single pallas_call.

    x_nchw: (N, C, H, W); block_params: sequence of (v1, g1, b1, v2, g2, b2)
    per block, with v* OIHW conv weights and g*/b* per-output-channel vectors.
    """
    N, C, H, W = x_nchw.shape
    HW = H * W
    L = len(block_params)

    Nb = _pick_group(N, C, HW, max_images_per_step)
    G, Gm = Nb * C, Nb * block_params[0][0].shape[0]

    w1l, b1l, w2l, b2l = [], [], [], []
    for (v1, g1, b1, v2, g2, b2) in block_params:
        w1n = _weight_norm(v1, g1)
        w2n = _weight_norm(v2, g2) * RES_SCALE            # fold res_scale in
        w1l.append(_pack_weight(w1n, Nb))                 # (3, 3*Gm, G)
        w2l.append(_pack_weight(w2n, Nb))                 # (3, 3*G, Gm)
        b1l.append(jnp.tile(b1, Nb).reshape(Gm, 1))
        b2l.append(jnp.tile(RES_SCALE * b2, Nb).reshape(G, 1))
    w1, b1, w2, b2 = (jnp.stack(a) for a in (w1l, b1l, w2l, b2l))

    # (N, C, H, W) -> (N*C, H*W): free reshape, no transpose, no channel pad.
    xf = x_nchw.reshape(N * C, HW)

    # Explicit VMEM budget (double-buffered I/O + resident weights + temps).
    act = _vmem_tile_bytes((G, HW))
    wts = sum(_vmem_tile_bytes(a.shape) for a in (w1, b1, w2, b2))
    tmp = (_vmem_tile_bytes((3 * Gm, HW)) + 4 * _vmem_tile_bytes((Gm, HW))
           + _vmem_tile_bytes((3 * G, HW)) + 4 * _vmem_tile_bytes((G, HW)))
    vmem_limit = int(min(max(4 * act + 2 * wts + 2 * tmp, 16 * 2**20), 48 * 2**20))

    kernel = functools.partial(resblock_stack_kernel, H=H, W=W)
    out = pl.pallas_call(
        kernel,
        out_shape=jax.ShapeDtypeStruct((N * C, HW), x_nchw.dtype),
        grid=(N // Nb,),
        in_specs=[
            pl.BlockSpec((G, HW), lambda i: (i, 0)),
            pl.BlockSpec((L, 3, 3 * Gm, G), lambda i: (0, 0, 0, 0)),
            pl.BlockSpec((L, Gm, 1), lambda i: (0, 0, 0)),
            pl.BlockSpec((L, 3, 3 * G, Gm), lambda i: (0, 0, 0, 0)),
            pl.BlockSpec((L, G, 1), lambda i: (0, 0, 0)),
        ],
        out_specs=pl.BlockSpec((G, HW), lambda i: (i, 0)),
        compiler_params=pltpu.CompilerParams(
            dimension_semantics=("parallel",),
            vmem_limit_bytes=vmem_limit),
    )(xf, w1, b1, w2, b2)

    return out.reshape(N, C, H, W)


def resblock_forward(x_nchw, v1, g1, b1, v2, g2, b2):
    """Single ResBlock.forward: s + res_scale * conv2(relu(conv1(s)))."""
    return resblock_stack_forward(x_nchw, [(v1, g1, b1, v2, g2, b2)])


def _reference_forward(x_nchw, v1, g1, b1, v2, g2, b2):
    # Pure-JAX reference (lax conv, wrap padding) for the correctness check.
    def conv(x, w, b):
        xp = jnp.pad(x, ((0, 0), (0, 0), (1, 1), (1, 1)), mode="wrap")
        y = jax.lax.conv_general_dilated(
            xp, w, (1, 1), "VALID",
            dimension_numbers=("NCHW", "OIHW", "NCHW"))
        return y + b.reshape(1, -1, 1, 1)

    h = jax.nn.relu(conv(x_nchw, _weight_norm(v1, g1), b1))
    y = conv(h, _weight_norm(v2, g2), b2)
    return x_nchw + RES_SCALE * y


if __name__ == "__main__":
    key = jax.random.PRNGKey(0)

    N, C, H, W = 2, N_FEATS, 16, 16
    Cmid = N_FEATS * EXPANSION
    L = 5          # > 4 so the fused stack exercises the fori_loop path

    keys = jax.random.split(key, 2 + 6 * L)
    x = jax.random.normal(keys[0], (N, C, H, W), jnp.float32)
    x4 = jax.random.normal(keys[1], (2 * N, C, H, W), jnp.float32)

    params = []
    for l in range(L):
        k = keys[2 + 6 * l: 2 + 6 * (l + 1)]
        v1 = jax.random.normal(k[0], (Cmid, C, KH, KW), jnp.float32) * 0.1
        g1 = jax.random.uniform(k[1], (Cmid,), jnp.float32, minval=0.5, maxval=1.5)
        b1 = jax.random.normal(k[2], (Cmid,), jnp.float32) * 0.1
        v2 = jax.random.normal(k[3], (C, Cmid, KH, KW), jnp.float32) * 0.1
        g2 = jax.random.uniform(k[4], (C,), jnp.float32, minval=0.5, maxval=1.5)
        b2 = jax.random.normal(k[5], (C,), jnp.float32) * 0.1
        params.append((v1, g1, b1, v2, g2, b2))

    # 1) single ResBlock (original module forward; static-unroll path)
    y1 = jax.block_until_ready(resblock_forward(x, *params[0]))
    y1_ref = _reference_forward(x, *params[0])
    assert y1.shape == (N, C, H, W)
    assert jnp.allclose(y1, y1_ref, atol=1e-4, rtol=1e-4), "single-block mismatch"

    # 2) fused stack of L ResBlocks in one pallas_call (PhySR body; L > 4)
    yL = jax.block_until_ready(resblock_stack_forward(x, params))
    yL_ref = x
    for p in params:
        yL_ref = _reference_forward(yL_ref, *p)
    assert yL.shape == (N, C, H, W)
    assert jnp.allclose(yL, yL_ref, atol=1e-4, rtol=1e-4), "fused-stack mismatch"

    # 3) larger batch, 2 images per grid step (exercises grid > 1 batch tiling)
    y4 = jax.block_until_ready(
        resblock_stack_forward(x4, params[:3], max_images_per_step=2))
    y4_ref = x4
    for p in params[:3]:
        y4_ref = _reference_forward(y4_ref, *p)
    assert y4.shape == (2 * N, C, H, W)
    assert jnp.allclose(y4, y4_ref, atol=1e-4, rtol=1e-4), "batched-grid mismatch"

    print("KERNEL_OK")
</pallas_src>

<mosaic_0001>
module attributes {stable_mosaic.version = 11 : i64} {
  func.func @resblock_stack_kernel(%arg0: i32, %arg1: memref<8x256xf32, #tpu.memory_space<vmem>>, %arg2: memref<1x3x96x8xf32, #tpu.memory_space<vmem>>, %arg3: memref<1x32x1xf32, #tpu.memory_space<vmem>>, %arg4: memref<1x3x24x32xf32, #tpu.memory_space<vmem>>, %arg5: memref<1x8x1xf32, #tpu.memory_space<vmem>>, %arg6: memref<8x256xf32, #tpu.memory_space<vmem>>) attributes {dimension_semantics = [#tpu.dimension_semantics<parallel>], iteration_bounds = array<i64: 1>, scalar_prefetch = 0 : i64, scratch_operands = 0 : i64, tpu.core_type = #tpu.core_type<tc>, window_params = [{transform_indices = @transform_0, window_bounds = array<i64: 8, 256>}, {pipeline_mode = #tpu.pipeline_mode<synchronous>, transform_indices = @transform_1, window_bounds = array<i64: 1, 3, 96, 8>}, {pipeline_mode = #tpu.pipeline_mode<synchronous>, transform_indices = @transform_2, window_bounds = array<i64: 1, 32, 1>}, {pipeline_mode = #tpu.pipeline_mode<synchronous>, transform_indices = @transform_3, window_bounds = array<i64: 1, 3, 24, 32>}, {pipeline_mode = #tpu.pipeline_mode<synchronous>, transform_indices = @transform_4, window_bounds = array<i64: 1, 8, 1>}, {transform_indices = @transform_5, window_bounds = array<i64: 8, 256>}]} {
    %0 = tpu.iota {dimensions = array<i32: 1>} : vector<1x256xi32>
    %c16_i32 = arith.constant 16 : i32
    %c0_i32 = arith.constant 0 : i32
    %1 = arith.cmpi eq, %c16_i32, %c0_i32 : i32
    %c1_i32 = arith.constant 1 : i32
    %2 = arith.select %1, %c1_i32, %c16_i32 : i32
    %3 = vector.broadcast %2 : i32 to vector<1x256xi32>
    %4 = arith.remsi %0, %3 : vector<1x256xi32>
    %c0_i32_0 = arith.constant 0 : i32
    %5 = vector.broadcast %c0_i32_0 : i32 to vector<1x256xi32>
    %6 = arith.cmpi ne, %4, %5 : vector<1x256xi32>
    %c0_i32_1 = arith.constant 0 : i32
    %7 = vector.broadcast %c0_i32_1 : i32 to vector<1x256xi32>
    %8 = arith.cmpi slt, %4, %7 : vector<1x256xi32>
    %c0_i32_2 = arith.constant 0 : i32
    %9 = arith.cmpi slt, %2, %c0_i32_2 : i32
    %10 = vector.broadcast %9 : i1 to vector<1x256xi1>
    %11 = vector.broadcast %10 : vector<1x256xi1> to vector<1x256xi1>
    %12 = arith.xori %8, %11 : vector<1x256xi1>
    %13 = arith.andi %12, %6 : vector<1x256xi1>
    %14 = vector.broadcast %2 : i32 to vector<1x256xi32>
    %15 = arith.addi %4, %14 : vector<1x256xi32>
    %16 = arith.select %13, %15, %4 : vector<1x256xi1>, vector<1x256xi32>
    %c0_i32_3 = arith.constant 0 : i32
    %17 = vector.broadcast %c0_i32_3 : i32 to vector<1x256xi32>
    %18 = arith.cmpi eq, %16, %17 : vector<1x256xi32>
    %c15_i32 = arith.constant 15 : i32
    %19 = vector.broadcast %c15_i32 : i32 to vector<1x256xi32>
    %20 = arith.cmpi eq, %16, %19 : vector<1x256xi32>
    %c0 = arith.constant 0 : index
    %c0_4 = arith.constant 0 : index
    %21 = vector.load %arg1[%c0, %c0_4] : memref<8x256xf32, #tpu.memory_space<vmem>>, vector<8x256xf32>
    %c0_5 = arith.constant 0 : index
    %c0_6 = arith.constant 0 : index
    %c0_7 = arith.constant 0 : index
    %c0_8 = arith.constant 0 : index
    %22 = vector.load %arg2[%c0_5, %c0_6, %c0_7, %c0_8] : memref<1x3x96x8xf32, #tpu.memory_space<vmem>>, vector<1x3x96x8xf32>
    %23 = vector.shape_cast %22 : vector<1x3x96x8xf32> to vector<3x96x8xf32>
    %c0_9 = arith.constant 0 : index
    %c0_10 = arith.constant 0 : index
    %c0_11 = arith.constant 0 : index
    %c0_12 = arith.constant 0 : index
    %24 = vector.load %arg4[%c0_9, %c0_10, %c0_11, %c0_12] : memref<1x3x24x32xf32, #tpu.memory_space<vmem>>, vector<1x3x24x32xf32>
    %25 = vector.shape_cast %24 : vector<1x3x24x32xf32> to vector<3x24x32xf32>
    %26 = vector.extract_strided_slice %23 {offsets = [0, 0, 0], sizes = [1, 96, 8], strides = [1, 1, 1]} : vector<3x96x8xf32> to vector<1x96x8xf32>
    %27 = vector.shape_cast %26 : vector<1x96x8xf32> to vector<96x8xf32>
    %28 = vector.extract_strided_slice %23 {offsets = [1, 0, 0], sizes = [1, 96, 8], strides = [1, 1, 1]} : vector<3x96x8xf32> to vector<1x96x8xf32>
    %29 = vector.shape_cast %28 : vector<1x96x8xf32> to vector<96x8xf32>
    %30 = vector.extract_strided_slice %23 {offsets = [2, 0, 0], sizes = [1, 96, 8], strides = [1, 1, 1]} : vector<3x96x8xf32> to vector<1x96x8xf32>
    %31 = vector.shape_cast %30 : vector<1x96x8xf32> to vector<96x8xf32>
    %c0_13 = arith.constant 0 : index
    %c0_14 = arith.constant 0 : index
    %c0_15 = arith.constant 0 : index
    %32 = vector.load %arg3[%c0_13, %c0_14, %c0_15] : memref<1x32x1xf32, #tpu.memory_space<vmem>>, vector<1x32x1xf32>
    %33 = vector.shape_cast %32 : vector<1x32x1xf32> to vector<32x1xf32>
    %c241_i32 = arith.constant 241 : i32
    %34 = tpu.dynamic_rotate %21 by %c241_i32 dim 1 : vector<8x256xf32>, i32 -> vector<8x256xf32>
    %c1_i32_16 = arith.constant 1 : i32
    %35 = tpu.dynamic_rotate %21 by %c1_i32_16 dim 1 : vector<8x256xf32>, i32 -> vector<8x256xf32>
    %36 = vector.shape_cast %18 : vector<1x256xi1> to vector<1x256xi1>
    %37 = vector.broadcast %36 : vector<1x256xi1> to vector<8x256xi1>
    %38 = arith.select %37, %34, %35 : vector<8x256xi1>, vector<8x256xf32>
    %c15_i32_17 = arith.constant 15 : i32
    %39 = tpu.dynamic_rotate %21 by %c15_i32_17 dim 1 : vector<8x256xf32>, i32 -> vector<8x256xf32>
    %c255_i32 = arith.constant 255 : i32
    %40 = tpu.dynamic_rotate %21 by %c255_i32 dim 1 : vector<8x256xf32>, i32 -> vector<8x256xf32>
    %41 = vector.shape_cast %20 : vector<1x256xi1> to vector<1x256xi1>
    %42 = vector.broadcast %41 : vector<1x256xi1> to vector<8x256xi1>
    %43 = arith.select %42, %39, %40 : vector<8x256xi1>, vector<8x256xf32>
    %cst = arith.constant dense<0.000000e+00> : vector<96x256xf32>
    %44 = tpu.matmul %27, %38, %cst {dimension_numbers = #tpu.dot_dimension_numbers<[1], [0], [0], [1], [0, 0, 1, 1], [], []>} : vector<96x8xf32>, vector<8x256xf32>, vector<96x256xf32> -> vector<96x256xf32>
    %cst_18 = arith.constant dense<0.000000e+00> : vector<96x256xf32>
    %45 = tpu.matmul %29, %21, %cst_18 {dimension_numbers = #tpu.dot_dimension_numbers<[1], [0], [0], [1], [0, 0, 1, 1], [], []>} : vector<96x8xf32>, vector<8x256xf32>, vector<96x256xf32> -> vector<96x256xf32>
    %46 = arith.addf %44, %45 : vector<96x256xf32>
    %cst_19 = arith.constant dense<0.000000e+00> : vector<96x256xf32>
    %47 = tpu.matmul %31, %43, %cst_19 {dimension_numbers = #tpu.dot_dimension_numbers<[1], [0], [0], [1], [0, 0, 1, 1], [], []>} : vector<96x8xf32>, vector<8x256xf32>, vector<96x256xf32> -> vector<96x256xf32>
    %48 = arith.addf %46, %47 : vector<96x256xf32>
    %49 = vector.extract_strided_slice %48 {offsets = [0, 0], sizes = [32, 256], strides = [1, 1]} : vector<96x256xf32> to vector<32x256xf32>
    %c16_i32_20 = arith.constant 16 : i32
    %50 = tpu.dynamic_rotate %49 by %c16_i32_20 dim 1 : vector<32x256xf32>, i32 -> vector<32x256xf32>
    %51 = vector.extract_strided_slice %48 {offsets = [32, 0], sizes = [32, 256], strides = [1, 1]} : vector<96x256xf32> to vector<32x256xf32>
    %52 = arith.addf %50, %51 : vector<32x256xf32>
    %53 = vector.extract_strided_slice %48 {offsets = [64, 0], sizes = [32, 256], strides = [1, 1]} : vector<96x256xf32> to vector<32x256xf32>
    %c240_i32 = arith.constant 240 : i32
    %54 = tpu.dynamic_rotate %53 by %c240_i32 dim 1 : vector<32x256xf32>, i32 -> vector<32x256xf32>
    %55 = arith.addf %52, %54 : vector<32x256xf32>
    %56 = vector.broadcast %33 : vector<32x1xf32> to vector<32x256xf32>
    %57 = arith.addf %55, %56 : vector<32x256xf32>
    %cst_21 = arith.constant 0.000000e+00 : f32
    %58 = vector.broadcast %cst_21 : f32 to vector<32x256xf32>
    %59 = arith.maximumf %57, %58 : vector<32x256xf32>
    %60 = vector.extract_strided_slice %25 {offsets = [0, 0, 0], sizes = [1, 24, 32], strides = [1, 1, 1]} : vector<3x24x32xf32> to vector<1x24x32xf32>
    %61 = vector.shape_cast %60 : vector<1x24x32xf32> to vector<24x32xf32>
    %62 = vector.extract_strided_slice %25 {offsets = [1, 0, 0], sizes = [1, 24, 32], strides = [1, 1, 1]} : vector<3x24x32xf32> to vector<1x24x32xf32>
    %63 = vector.shape_cast %62 : vector<1x24x32xf32> to vector<24x32xf32>
    %64 = vector.extract_strided_slice %25 {offsets = [2, 0, 0], sizes = [1, 24, 32], strides = [1, 1, 1]} : vector<3x24x32xf32> to vector<1x24x32xf32>
    %65 = vector.shape_cast %64 : vector<1x24x32xf32> to vector<24x32xf32>
    %c0_22 = arith.constant 0 : index
    %c0_23 = arith.constant 0 : index
    %c0_24 = arith.constant 0 : index
    %66 = vector.load %arg5[%c0_22, %c0_23, %c0_24] : memref<1x8x1xf32, #tpu.memory_space<vmem>>, vector<1x8x1xf32>
    %67 = vector.shape_cast %66 : vector<1x8x1xf32> to vector<8x1xf32>
    %c241_i32_25 = arith.constant 241 : i32
    %68 = tpu.dynamic_rotate %59 by %c241_i32_25 dim 1 : vector<32x256xf32>, i32 -> vector<32x256xf32>
    %c1_i32_26 = arith.constant 1 : i32
    %69 = tpu.dynamic_rotate %59 by %c1_i32_26 dim 1 : vector<32x256xf32>, i32 -> vector<32x256xf32>
    %70 = vector.shape_cast %18 : vector<1x256xi1> to vector<1x256xi1>
    %71 = vector.broadcast %70 : vector<1x256xi1> to vector<32x256xi1>
    %72 = arith.select %71, %68, %69 : vector<32x256xi1>, vector<32x256xf32>
    %c15_i32_27 = arith.constant 15 : i32
    %73 = tpu.dynamic_rotate %59 by %c15_i32_27 dim 1 : vector<32x256xf32>, i32 -> vector<32x256xf32>
    %c255_i32_28 = arith.constant 255 : i32
    %74 = tpu.dynamic_rotate %59 by %c255_i32_28 dim 1 : vector<32x256xf32>, i32 -> vector<32x256xf32>
    %75 = vector.shape_cast %20 : vector<1x256xi1> to vector<1x256xi1>
    %76 = vector.broadcast %75 : vector<1x256xi1> to vector<32x256xi1>
    %77 = arith.select %76, %73, %74 : vector<32x256xi1>, vector<32x256xf32>
    %cst_29 = arith.constant dense<0.000000e+00> : vector<24x256xf32>
    %78 = tpu.matmul %61, %72, %cst_29 {dimension_numbers = #tpu.dot_dimension_numbers<[1], [0], [0], [1], [0, 0, 1, 1], [], []>} : vector<24x32xf32>, vector<32x256xf32>, vector<24x256xf32> -> vector<24x256xf32>
    %cst_30 = arith.constant dense<0.000000e+00> : vector<24x256xf32>
    %79 = tpu.matmul %63, %59, %cst_30 {dimension_numbers = #tpu.dot_dimension_numbers<[1], [0], [0], [1], [0, 0, 1, 1], [], []>} : vector<24x32xf32>, vector<32x256xf32>, vector<24x256xf32> -> vector<24x256xf32>
    %80 = arith.addf %78, %79 : vector<24x256xf32>
    %cst_31 = arith.constant dense<0.000000e+00> : vector<24x256xf32>
    %81 = tpu.matmul %65, %77, %cst_31 {dimension_numbers = #tpu.dot_dimension_numbers<[1], [0], [0], [1], [0, 0, 1, 1], [], []>} : vector<24x32xf32>, vector<32x256xf32>, vector<24x256xf32> -> vector<24x256xf32>
    %82 = arith.addf %80, %81 : vector<24x256xf32>
    %83 = vector.extract_strided_slice %82 {offsets = [0, 0], sizes = [8, 256], strides = [1, 1]} : vector<24x256xf32> to vector<8x256xf32>
    %c16_i32_32 = arith.constant 16 : i32
    %84 = tpu.dynamic_rotate %83 by %c16_i32_32 dim 1 : vector<8x256xf32>, i32 -> vector<8x256xf32>
    %85 = vector.extract_strided_slice %82 {offsets = [8, 0], sizes = [8, 256], strides = [1, 1]} : vector<24x256xf32> to vector<8x256xf32>
    %86 = arith.addf %84, %85 : vector<8x256xf32>
    %87 = vector.extract_strided_slice %82 {offsets = [16, 0], sizes = [8, 256], strides = [1, 1]} : vector<24x256xf32> to vector<8x256xf32>
    %c240_i32_33 = arith.constant 240 : i32
    %88 = tpu.dynamic_rotate %87 by %c240_i32_33 dim 1 : vector<8x256xf32>, i32 -> vector<8x256xf32>
    %89 = arith.addf %86, %88 : vector<8x256xf32>
    %90 = vector.broadcast %67 : vector<8x1xf32> to vector<8x256xf32>
    %91 = arith.addf %89, %90 : vector<8x256xf32>
    %92 = arith.addf %21, %91 : vector<8x256xf32>
    %c0_34 = arith.constant 0 : index
    %c0_35 = arith.constant 0 : index
    %93 = vector.load %arg6[%c0_34, %c0_35] : memref<8x256xf32, #tpu.memory_space<vmem>>, vector<8x256xf32>
    tpu.vector_store %arg6[%c0_34, %c0_35], %92 {strides = array<i32>} : memref<8x256xf32, #tpu.memory_space<vmem>>, vector<8x256xf32>,
    return
  }
  func.func @transform_0(%arg0: i32) -> (i32, i32) {
    %c0_i32 = arith.constant 0 : i32
    %c0_i32_0 = arith.constant 0 : i32
    return %arg0, %c0_i32 : i32, i32
  }
  func.func @transform_1(%arg0: i32) -> (i32, i32, i32, i32) {
    %c0_i32 = arith.constant 0 : i32
    %c0_i32_0 = arith.constant 0 : i32
    %c0_i32_1 = arith.constant 0 : i32
    %c0_i32_2 = arith.constant 0 : i32
    %c0_i32_3 = arith.constant 0 : i32
    return %c0_i32, %c0_i32_0, %c0_i32_1, %c0_i32_2 : i32, i32, i32, i32
  }
  func.func @transform_2(%arg0: i32) -> (i32, i32, i32) {
    %c0_i32 = arith.constant 0 : i32
    %c0_i32_0 = arith.constant 0 : i32
    %c0_i32_1 = arith.constant 0 : i32
    %c0_i32_2 = arith.constant 0 : i32
    return %c0_i32, %c0_i32_0, %c0_i32_1 : i32, i32, i32
  }
  func.func @transform_3(%arg0: i32) -> (i32, i32, i32, i32) {
    %c0_i32 = arith.constant 0 : i32
    %c0_i32_0 = arith.constant 0 : i32
    %c0_i32_1 = arith.constant 0 : i32
    %c0_i32_2 = arith.constant 0 : i32
    %c0_i32_3 = arith.constant 0 : i32
    return %c0_i32, %c0_i32_0, %c0_i32_1, %c0_i32_2 : i32, i32, i32, i32
  }
  func.func @transform_4(%arg0: i32) -> (i32, i32, i32) {
    %c0_i32 = arith.constant 0 : i32
    %c0_i32_0 = arith.constant 0 : i32
    %c0_i32_1 = arith.constant 0 : i32
    %c0_i32_2 = arith.constant 0 : i32
    return %c0_i32, %c0_i32_0, %c0_i32_1 : i32, i32, i32
  }
  func.func @transform_5(%arg0: i32) -> (i32, i32) {
    %c0_i32 = arith.constant 0 : i32
    %c0_i32_0 = arith.constant 0 : i32
    return %arg0, %c0_i32 : i32, i32
  }
}

</mosaic_0001>

<bundles_post_ra>
// kernel: tpu_custom_call.1
= control target key start
LH: loop header
LB: loop body
LE: loop exit
PB: predicated region body
PF: predicated region fallthrough
CT: control target
= control target key end

     0   :  { %vm143_vm0 = vcmask 64512   ;;  %s1892_s0 = inlined_call_operand.vmem [shape: f32[8,256], index: 0, kind: input, shape index: {}]   ;;  %s1893_s1 = inlined_call_operand.vmem [shape: f32[1,3,96,8], index: 1, kind: input, shape index: {}]   ;;  %s1894_s2 = inlined_call_operand.vmem [shape: f32[1,32,1], index: 2, kind: input, shape index: {}]   ;;  %s1895_s3 = inlined_call_operand.vmem [shape: f32[1,3,24,32], index: 3, kind: input, shape index: {}]   ;;  %s1896_s4 = inlined_call_operand.vmem [shape: f32[1,8,1], index: 4, kind: input, shape index: {}]   ;;  %s1897_s5 = inlined_call_operand.hbm [shape: f32[8,256], index: 5, kind: output, shape index: {}]  }
   0x1   :  { %v52_v0 = vld [vmem:[%s1892_s0] sm:$0xff]  ;;  %v53_v1 = vld [vmem:[%s1892_s0 + $0x8] sm:$0xff] }
   0x2   :  { %v66_v2 = vld [vmem:[%s1893_s1 + $0x60] sm:$0xff]  ;;  %v1152_v3 = vpack.i.bf16 %v53_v1, %v52_v0  ;;  %195 = vmatpush.msra.mxu0 %v52_v0  ;;  %248 = vmatpush.msra.mxu1 %v53_v1 }
   0x3   :  { %1042 = vmatmul.msk.f32.vlgmr.msra.gmra.mxu0 %vm143_vm0, %v66_v2 }
   0x4   :  { %10 = vsyncpa [#allocation3], 0  ;;  %s1273_s24 = smov 15   ;;  %s1274_s25 = smov 113   ;;  %1054 = vmatmul.msk.f32.vlgmr.msra.gmra.mxu1 %vm143_vm0, %v66_v2  ;;  %1132 = vmatpush.msra.mxu2 %v52_v0  ;;  %v67_v4 = vld [vmem:[%s1893_s1 + $0x68] sm:$0xff]  ;;  %v68_v5 = vld [vmem:[%s1893_s1 + $0x70] sm:$0xff]  ;;  %v21_v15 = vlaneseq }
   0x5   :  { %1153 = vrot.lane.b32.xlu1 %v1152_v3, %s1273_s24  ;;  %1143 = vrot.lane.b32.xlu0 %v1152_v3, %s1274_s25  ;;  %s1275_s28 = smov 127   ;;  %s1276_s29 = smov 1   ;;  %v69_v6 = vld [vmem:[%s1893_s1 + $0x78] sm:$0xff]  ;;  %v70_v7 = vld [vmem:[%s1893_s1 + $0x80] sm:$0xff]  ;;  %vm809_vm11 = vcmask 261120  }
   0x6   :  { %1133 = vmatpush.msra.mxu3 %v53_v1  ;;  %v71_v8 = vld [vmem:[%s1893_s1 + $0x88] sm:$0xff]  ;;  %v72_v9 = vld [vmem:[%s1893_s1 + $0x90] sm:$0xff]  ;;  %v73_v10 = vld [vmem:[%s1893_s1 + $0x98] sm:$0xff]  ;;  %v1381_v16 = vand.u32 127, %v21_v15  ;;  %s1279_s14 = smov 112  }
   0x7   :  { %v74_v11 = vld [vmem:[%s1893_s1 + $0xa0] sm:$0xff]  ;;  %v75_v12 = vld [vmem:[%s1893_s1 + $0xa8] sm:$0xff]  ;;  %v77_v13 = vld [vmem:[%s1893_s1 + $0xb8] sm:$0xff] }
   0x8   :  { %1053 = vmatmul.msk.f32.vlgmr.msra.gmra.mxu2 %vm143_vm0, %v77_v13  ;;  %1065 = vmatmul.msk.f32.vlgmr.msra.gmra.mxu3 %vm143_vm0, %v77_v13  ;;  %v76_v14 = vld [vmem:[%s1893_s1 + $0xb0] sm:$0xff]  ;;  %v23_v17 = vadd.s32 128, %v1381_v16  ;;  %v28_v20 = vand.u32 15, %v1381_v16  ;;  %vm127_vm1 = vcmp.lt.s32.totalorder %v1381_v16, 15  ;;  %vm107_vm2 = vcmp.lt.s32.totalorder %v1381_v16, 113  ;;  %v54_v48 = vld [vmem:[%s1893_s1] sm:$0xff] }
   0x9   :  { %vm114_vm4 = vcmp.lt.s32.totalorder %v1381_v16, 1  ;;  %vm134_vm6 = vcmp.lt.s32.totalorder %v1381_v16, 127  ;;  %v78_v49 = vld [vmem:[%s1893_s1 + $0xc0] sm:$0xff]  ;;  %v55_v50 = vld [vmem:[%s1893_s1 + $0x8] sm:$0xff]  ;;  %v56_v52 = vld [vmem:[%s1893_s1 + $0x10] sm:$0xff]  ;;  %v1277_v13 = vmov 0  }
   0xa   :  { %v35_v21 = vand.u32 15, %v23_v17  ;;  %vm1387_vm3 = vcmp.eq.s32.totalorder %v28_v20, 0  ;;  %vm1397_vm7 = vcmp.eq.s32.totalorder %v28_v20, 15  ;;  %v79_v51 = vld [vmem:[%s1893_s1 + $0xc8] sm:$0xff]  ;;  %v80_v53 = vld [vmem:[%s1893_s1 + $0xd0] sm:$0xff]  ;;  %v57_v56 = vld [vmem:[%s1893_s1 + $0x18] sm:$0xff]  ;;  %1163 = vset.pattern.permute.xlu1 %v1277_v13  ;;  %1162 = vset.pattern.permute.xlu2 %v1277_v13 }
   0xb   :  { %1043 = vmatmul.msk.f32.gmra.mxu0 %vm143_vm0, %v67_v4  ;;  %v81_v57 = vld [vmem:[%s1893_s1 + $0xd8] sm:$0xff]  ;;  %v58_v60 = vld [vmem:[%s1893_s1 + $0x20] sm:$0xff]  ;;  %v59_v0 = vld [vmem:[%s1893_s1 + $0x28] sm:$0xff]  ;;  %1244 = vset.pattern.permute.xlu0 %v1277_v13  ;;  %vm610_vm9 = vcmp.lt.s32.totalorder %v1381_v16, 16  ;;  %vm643_vm10 = vcmp.lt.s32.totalorder %v1381_v16, 112 }
   0xc   :  { %1055 = vmatmul.msk.f32.gmra.mxu1 %vm143_vm0, %v67_v4  ;;  %vm1392_vm5 = vcmp.eq.s32.totalorder %v35_v21, 0  ;;  %vm1403_vm8 = vcmp.eq.s32.totalorder %v35_v21, 15  ;;  %v82_v61 = vld [vmem:[%s1893_s1 + $0xe0] sm:$0xff]  ;;  %v83_v1 = vld [vmem:[%s1893_s1 + $0xe8] sm:$0xff]  ;;  %v60_v2 = vld [vmem:[%s1893_s1 + $0x30] sm:$0xff] }
   0xd   :  { %1158 = vrot.lane.b32.xlu1 %v1152_v3, %s1275_s28  ;;  %1148 = vrot.lane.b32.xlu0 %v1152_v3, %s1276_s29  ;;  %v84_v3 = vld [vmem:[%s1893_s1 + $0xf0] sm:$0xff]  ;;  %v63_v17 = vld [vmem:[%s1893_s1 + $0x48] sm:$0xff] }
   0xe   :  { %v64_v21 = vld [vmem:[%s1893_s1 + $0x50] sm:$0xff]  ;;  %v91_v27 = vld [vmem:[%s1895_s3 + $0x8] sm:$0xff]  ;;  %v98_v30 = vld [vmem:[%s1895_s3 + $0x40] sm:$0xff] }
   0xf   :  { %v1246_v16 = vld [vmem:[%s1892_s0 + $0x8] sm:$0xff] }
  0x13   :  { %1044 = vmatmul.msk.f32.gmra.mxu0 %vm143_vm0, %v68_v5 }
  0x14   :  { %1056 = vmatmul.msk.f32.gmra.mxu1 %vm143_vm0, %v68_v5 }
  0x1b   :  { %1045 = vmatmul.msk.f32.gmra.mxu0 %vm143_vm0, %v69_v6 }
  0x1c   :  { %1057 = vmatmul.msk.f32.gmra.mxu1 %vm143_vm0, %v69_v6  ;;  %v61_v6 = vld [vmem:[%s1893_s1 + $0x38] sm:$0xff] }
  0x23   :  { %1046 = vmatmul.msk.f32.gmra.mxu0 %vm143_vm0, %v70_v7 }
  0x24   :  { %1058 = vmatmul.msk.f32.gmra.mxu1 %vm143_vm0, %v70_v7  ;;  %v85_v7 = vld [vmem:[%s1893_s1 + $0xf8] sm:$0xff] }
  0x2b   :  { %1047 = vmatmul.msk.f32.gmra.mxu0 %vm143_vm0, %v71_v8 }
  0x2c   :  { %1059 = vmatmul.msk.f32.gmra.mxu1 %vm143_vm0, %v71_v8 }
  0x33   :  { %1048 = vmatmul.msk.f32.gmra.mxu0 %vm143_vm0, %v72_v9 }
  0x34   :  { %1060 = vmatmul.msk.f32.gmra.mxu1 %vm143_vm0, %v72_v9 }
  0x3b   :  { %1049 = vmatmul.msk.f32.gmra.mxu0 %vm143_vm0, %v73_v10 }
  0x3c   :  { %1061 = vmatmul.msk.f32.gmra.mxu1 %vm143_vm0, %v73_v10  ;;  %v62_v10 = vld [vmem:[%s1893_s1 + $0x40] sm:$0xff] }
  0x43   :  { %1050 = vmatmul.msk.f32.gmra.mxu0 %vm143_vm0, %v74_v11 }
  0x44   :  { %1062 = vmatmul.msk.f32.gmra.mxu1 %vm143_vm0, %v74_v11  ;;  %v101_v11 = vld [vmem:[%s1894_s2 + $0x10] sm:$0xff] }
  0x45   :  { %672 = vperm.xlu1 %1163, %v101_v11  }
  0x4b   :  { %1051 = vmatmul.msk.f32.gmra.mxu0 %vm143_vm0, %v75_v12 }
  0x4c   :  { %1063 = vmatmul.msk.f32.gmra.mxu1 %vm143_vm0, %v75_v12  ;;  %v86_v12 = vld [vmem:[%s1893_s1 + $0x100] sm:$0xff] }
  0x53   :  { %1052 = vmatmul.msk.f32.gmra.mxu0 %vm143_vm0, %v76_v14 }
  0x54   :  { %1064 = vmatmul.msk.f32.gmra.mxu1 %vm143_vm0, %v76_v14 }
  0x77   :  { %v1154_v18 = vpop.permute.xlu1 %1153  ;;  %v1144_v19 = vpop.permute.xlu0 %1143 }
  0x78   :  { %v1156_v22 = vunpack.i.h.bf16 %v1154_v18  ;;  %v1155_v23 = vunpack.i.l.bf16 %v1154_v18  ;;  %v1146_v24 = vunpack.i.h.bf16 %v1144_v19  ;;  %v1145_v25 = vunpack.i.l.bf16 %v1144_v19  ;;  %v87_v18 = vld [vmem:[%s1893_s1 + $0x108] sm:$0xff] }
  0x7a   :  { %v129_v31 = vsel %vm127_vm1, %v1156_v22, %v1155_v23  ;;  %v128_v33 = vsel %vm127_vm1, %v1155_v23, %v1156_v22  ;;  %v108_v38 = vsel %vm107_vm2, %v1145_v25, %v1146_v24  ;;  %v109_v39 = vsel %vm107_vm2, %v1146_v24, %v1145_v25  ;;  %v88_v22 = vld [vmem:[%s1893_s1 + $0x110] sm:$0xff]  ;;  %v65_v23 = vld [vmem:[%s1893_s1 + $0x58] sm:$0xff] }
  0x7b   :  { %v89_v24 = vld [vmem:[%s1893_s1 + $0x118] sm:$0xff]  ;;  %s1278_s1 = smov 16  }
  0x7f   :  { %v1159_v28 = vpop.permute.xlu1 %1158  ;;  %v1149_v29 = vpop.permute.xlu0 %1148 }
  0x80   :  { %v1161_v34 = vunpack.i.h.bf16 %v1159_v28  ;;  %v1160_v35 = vunpack.i.l.bf16 %v1159_v28  ;;  %v1151_v36 = vunpack.i.h.bf16 %v1149_v29  ;;  %v1150_v37 = vunpack.i.l.bf16 %v1149_v29  ;;  %v1457_v54 = vpop.f32.mrf.mxu0 }
  0x81   :  { %v1459_v55 = vpop.f32.mrf.mxu1 }
  0x82   :  { %v116_v40 = vsel %vm114_vm4, %v1151_v36, %v1150_v37  ;;  %v115_v41 = vsel %vm114_vm4, %v1150_v37, %v1151_v36  ;;  %v135_v42 = vsel %vm134_vm6, %v1160_v35, %v1161_v34  ;;  %v136_v43 = vsel %vm134_vm6, %v1161_v34, %v1160_v35 }
  0x83   :  { %v121_v44 = vsel %vm1387_vm3, %v108_v38, %v116_v40  ;;  %v122_v45 = vsel %vm1392_vm5, %v109_v39, %v115_v41  ;;  %v141_v46 = vsel %vm1397_vm7, %v129_v31, %v135_v42  ;;  %v142_v47 = vsel %vm1403_vm8, %v128_v33, %v136_v43  ;;  %v102_v33 = vld [vmem:[%s1894_s2 + $0x18] sm:$0xff] }
  0x84   :  { %337 = vmatpush.msrb.mxu2 %v121_v44  ;;  %390 = vmatpush.msrb.mxu3 %v122_v45 }
  0x85   :  { %479 = vmatpush.msrb.mxu0 %v141_v46  ;;  %532 = vmatpush.msrb.mxu1 %v142_v47 }
  0x86   :  { %1066 = vmatmul.msk.f32.vlgmr.msrb.gmra.mxu2 %vm143_vm0, %v54_v48  ;;  %1078 = vmatmul.msk.f32.vlgmr.msrb.gmra.mxu3 %vm143_vm0, %v54_v48 }
  0x87   :  { %1090 = vmatmul.msk.f32.vlgmr.msrb.gmra.mxu0 %vm143_vm0, %v78_v49  ;;  %1102 = vmatmul.msk.f32.vlgmr.msrb.gmra.mxu1 %vm143_vm0, %v78_v49 }
  0x88   :  { %v1473_v58 = vpop.f32.mrf.mxu0  ;;  %677 = vperm.xlu2 %1162, %v102_v33  }
  0x89   :  { %v1475_v59 = vpop.f32.mrf.mxu1 }
  0x8b   :  { %v1599_v38 = vpop.f32.mrf.mxu2  ;;  %v1601_v39 = vpop.f32.mrf.mxu3 }
  0x8e   :  { %1067 = vmatmul.msk.f32.gmra.mxu2 %vm143_vm0, %v55_v50  ;;  %1079 = vmatmul.msk.f32.gmra.mxu3 %vm143_vm0, %v55_v50 }
  0x8f   :  { %1091 = vmatmul.msk.f32.gmra.mxu0 %vm143_vm0, %v79_v51  ;;  %1103 = vmatmul.msk.f32.gmra.mxu1 %vm143_vm0, %v79_v51 }
  0x90   :  { %v1487_v62 = vpop.f32.mrf.mxu0 }
  0x91   :  { %v1489_v63 = vpop.f32.mrf.mxu1 }
  0x96   :  { %1068 = vmatmul.msk.f32.gmra.mxu2 %vm143_vm0, %v56_v52  ;;  %1080 = vmatmul.msk.f32.gmra.mxu3 %vm143_vm0, %v56_v52 }
  0x97   :  { %1092 = vmatmul.msk.f32.gmra.mxu0 %vm143_vm0, %v80_v53  ;;  %1104 = vmatmul.msk.f32.gmra.mxu1 %vm143_vm0, %v80_v53 }
  0x98   :  { %v1507_v4 = vpop.f32.mrf.mxu0 }
  0x99   :  { %v1509_v5 = vpop.f32.mrf.mxu1 }
  0x9e   :  { %1069 = vmatmul.msk.f32.gmra.mxu2 %vm143_vm0, %v57_v56  ;;  %1081 = vmatmul.msk.f32.gmra.mxu3 %vm143_vm0, %v57_v56 }
  0x9f   :  { %1093 = vmatmul.msk.f32.gmra.mxu0 %vm143_vm0, %v81_v57  ;;  %1105 = vmatmul.msk.f32.gmra.mxu1 %vm143_vm0, %v81_v57 }
  0xa0   :  { %v1523_v8 = vpop.f32.mrf.mxu0 }
  0xa1   :  { %v1525_v9 = vpop.f32.mrf.mxu1 }
  0xa6   :  { %1070 = vmatmul.msk.f32.gmra.mxu2 %vm143_vm0, %v58_v60  ;;  %1082 = vmatmul.msk.f32.gmra.mxu3 %vm143_vm0, %v58_v60 }
  0xa7   :  { %1094 = vmatmul.msk.f32.gmra.mxu0 %vm143_vm0, %v82_v61  ;;  %1106 = vmatmul.msk.f32.gmra.mxu1 %vm143_vm0, %v82_v61 }
  0xa8   :  { %v1542_v14 = vpop.f32.mrf.mxu0 }
  0xa9   :  { %v1544_v15 = vpop.f32.mrf.mxu1 }
  0xae   :  { %1071 = vmatmul.msk.f32.gmra.mxu2 %vm143_vm0, %v59_v0  ;;  %1083 = vmatmul.msk.f32.gmra.mxu3 %vm143_vm0, %v59_v0 }
  0xaf   :  { %1095 = vmatmul.msk.f32.gmra.mxu0 %vm143_vm0, %v83_v1  ;;  %1107 = vmatmul.msk.f32.gmra.mxu1 %vm143_vm0, %v83_v1 }
  0xb0   :  { %v1556_v19 = vpop.f32.mrf.mxu0 }
  0xb1   :  { %v1558_v20 = vpop.f32.mrf.mxu1 }
  0xb6   :  { %1072 = vmatmul.msk.f32.gmra.mxu2 %vm143_vm0, %v60_v2  ;;  %1084 = vmatmul.msk.f32.gmra.mxu3 %vm143_vm0, %v60_v2 }
  0xb7   :  { %1096 = vmatmul.msk.f32.gmra.mxu0 %vm143_vm0, %v84_v3  ;;  %1108 = vmatmul.msk.f32.gmra.mxu1 %vm143_vm0, %v84_v3 }
  0xb8   :  { %v1576_v25 = vpop.f32.mrf.mxu0 }
  0xb9   :  { %v1578_v28 = vpop.f32.mrf.mxu1 }
  0xbe   :  { %1073 = vmatmul.msk.f32.gmra.mxu2 %vm143_vm0, %v61_v6  ;;  %1085 = vmatmul.msk.f32.gmra.mxu3 %vm143_vm0, %v61_v6 }
  0xbf   :  { %1097 = vmatmul.msk.f32.gmra.mxu0 %vm143_vm0, %v85_v7  ;;  %1109 = vmatmul.msk.f32.gmra.mxu1 %vm143_vm0, %v85_v7 }
  0xc0   :  { %v1584_v29 = vpop.f32.mrf.mxu0 }
  0xc1   :  { %v1586_v31 = vpop.f32.mrf.mxu1 }
  0xc6   :  { %1074 = vmatmul.msk.f32.gmra.mxu2 %vm143_vm0, %v62_v10  ;;  %1086 = vmatmul.msk.f32.gmra.mxu3 %vm143_vm0, %v62_v10 }
  0xc7   :  { %1098 = vmatmul.msk.f32.gmra.mxu0 %vm143_vm0, %v86_v12  ;;  %1110 = vmatmul.msk.f32.gmra.mxu1 %vm143_vm0, %v86_v12 }
  0xc8   :  { %v1591_v34 = vpop.f32.mrf.mxu0 }
  0xc9   :  { %v1593_v35 = vpop.f32.mrf.mxu1 }
  0xce   :  { %1075 = vmatmul.msk.f32.gmra.mxu2 %vm143_vm0, %v63_v17  ;;  %1087 = vmatmul.msk.f32.gmra.mxu3 %vm143_vm0, %v63_v17 }
  0xcf   :  { %1099 = vmatmul.msk.f32.gmra.mxu0 %vm143_vm0, %v87_v18  ;;  %1111 = vmatmul.msk.f32.gmra.mxu1 %vm143_vm0, %v87_v18 }
  0xd0   :  { %v1595_v36 = vpop.f32.mrf.mxu0 }
  0xd1   :  { %v1597_v37 = vpop.f32.mrf.mxu1 }
  0xd6   :  { %1076 = vmatmul.msk.f32.gmra.mxu2 %vm143_vm0, %v64_v21  ;;  %1088 = vmatmul.msk.f32.gmra.mxu3 %vm143_vm0, %v64_v21 }
  0xd7   :  { %1100 = vmatmul.msk.f32.gmra.mxu0 %vm143_vm0, %v88_v22  ;;  %1112 = vmatmul.msk.f32.gmra.mxu1 %vm143_vm0, %v88_v22 }
  0xde   :  { %1077 = vmatmul.msk.f32.gmra.mxu2 %vm143_vm0, %v65_v23  ;;  %1089 = vmatmul.msk.f32.gmra.mxu3 %vm143_vm0, %v65_v23 }
  0xdf   :  { %1101 = vmatmul.msk.f32.gmra.mxu0 %vm143_vm0, %v89_v24  ;;  %1113 = vmatmul.msk.f32.gmra.mxu1 %vm143_vm0, %v89_v24 }
 0x104   :  { %v481_v40 = vpop.f32.mrf.mxu0  ;;  %v534_v41 = vpop.f32.mrf.mxu1 }
 0x109   :  { %v339_v42 = vpop.f32.mrf.mxu2  ;;  %v392_v43 = vpop.f32.mrf.mxu3 }
 0x10a   :  { %v340_v44 = vadd.f32 %v339_v42, %v1457_v54  ;;  %v393_v45 = vadd.f32 %v392_v43, %v1459_v55 }
 0x10c   :  { %v570_v46 = vadd.f32 %v481_v40, %v340_v44  ;;  %v571_v47 = vadd.f32 %v534_v41, %v393_v45  ;;  %v484_v48 = vpop.f32.mrf.mxu0  ;;  %v537_v49 = vpop.f32.mrf.mxu1 }
 0x10e   :  { %594 = vrot.lane.b32.xlu0 %v570_v46, %s1278_s1  ;;  %602 = vrot.lane.b32.xlu1 %v571_v47, %s1278_s1 }
 0x111   :  { %v342_v50 = vpop.f32.mrf.mxu2  ;;  %v395_v51 = vpop.f32.mrf.mxu3 }
 0x112   :  { %v343_v52 = vadd.f32 %v342_v50, %v1473_v58  ;;  %v396_v53 = vadd.f32 %v395_v51, %v1475_v59 }
 0x114   :  { %v572_v56 = vadd.f32 %v484_v48, %v343_v52  ;;  %v573_v57 = vadd.f32 %v537_v49, %v396_v53  ;;  %v487_v54 = vpop.f32.mrf.mxu0  ;;  %v540_v60 = vpop.f32.mrf.mxu1 }
 0x116   :  { %604 = vrot.lane.b32.xlu2 %v573_v57, %s1278_s1  ;;  %596 = vrot.lane.b32.xlu1 %v572_v56, %s1278_s1 }
 0x119   :  { %v345_v55 = vpop.f32.mrf.mxu2  ;;  %v398_v61 = vpop.f32.mrf.mxu3 }
 0x11a   :  { %v346_v0 = vadd.f32 %v345_v55, %v1487_v62  ;;  %v399_v1 = vadd.f32 %v398_v61, %v1489_v63 }
 0x11c   :  { %v574_v2 = vadd.f32 %v487_v54, %v346_v0  ;;  %v575_v3 = vadd.f32 %v540_v60, %v399_v1  ;;  %v490_v6 = vpop.f32.mrf.mxu0  ;;  %v543_v58 = vpop.f32.mrf.mxu1 }
 0x11e   :  { %598 = vrot.lane.b32.xlu0 %v574_v2, %s1278_s1  ;;  %606 = vrot.lane.b32.xlu1 %v575_v3, %s1278_s1 }
 0x121   :  { %v348_v59 = vpop.f32.mrf.mxu2  ;;  %v401_v7 = vpop.f32.mrf.mxu3 }
 0x122   :  { %v349_v10 = vadd.f32 %v348_v59, %v1507_v4  ;;  %v402_v62 = vadd.f32 %v401_v7, %v1509_v5 }
 0x124   :  { %v576_v11 = vadd.f32 %v490_v6, %v349_v10  ;;  %v493_v12 = vpop.f32.mrf.mxu0  ;;  %v546_v13 = vpop.f32.mrf.mxu1  ;;  %v577_v22 = vadd.f32 %v543_v58, %v402_v62 }
 0x126   :  { %600 = vrot.lane.b32.xlu2 %v576_v11, %s1278_s1 }
 0x129   :  { %v351_v63 = vpop.f32.mrf.mxu2  ;;  %v404_v17 = vpop.f32.mrf.mxu3 }
 0x12a   :  { %v352_v18 = vadd.f32 %v351_v63, %v1523_v8  ;;  %v405_v21 = vadd.f32 %v404_v17, %v1525_v9 }
 0x12c   :  { %v1620_v23 = vadd.f32 %v493_v12, %v352_v18  ;;  %v1622_v24 = vadd.f32 %v546_v13, %v405_v21  ;;  %v496_v33 = vpop.f32.mrf.mxu0  ;;  %v549_v4 = vpop.f32.mrf.mxu1 }
 0x12e   :  { %608 = vrot.lane.b32.xlu2 %v577_v22, %s1278_s1 }
 0x131   :  { %v354_v40 = vpop.f32.mrf.mxu2  ;;  %v407_v41 = vpop.f32.mrf.mxu3 }
 0x132   :  { %v355_v42 = vadd.f32 %v354_v40, %v1542_v14  ;;  %v408_v5 = vadd.f32 %v407_v41, %v1544_v15 }
 0x134   :  { %v1627_v43 = vadd.f32 %v496_v33, %v355_v42  ;;  %v1629_v8 = vadd.f32 %v549_v4, %v408_v5  ;;  %v499_v9 = vpop.f32.mrf.mxu0  ;;  %v552_v44 = vpop.f32.mrf.mxu1 }
 0x135   :  { %v673_v42 = vpop.permute.xlu1 %672 }
 0x139   :  { %v357_v45 = vpop.f32.mrf.mxu2  ;;  %v410_v46 = vpop.f32.mrf.mxu3 }
 0x13a   :  { %v358_v47 = vadd.f32 %v357_v45, %v1556_v19  ;;  %v411_v48 = vadd.f32 %v410_v46, %v1558_v20 }
 0x13c   :  { %v1633_v49 = vadd.f32 %v499_v9, %v358_v47  ;;  %v1635_v50 = vadd.f32 %v552_v44, %v411_v48  ;;  %v502_v51 = vpop.f32.mrf.mxu0  ;;  %v555_v14 = vpop.f32.mrf.mxu1 }
 0x141   :  { %v360_v52 = vpop.f32.mrf.mxu2  ;;  %v413_v15 = vpop.f32.mrf.mxu3 }
 0x142   :  { %v361_v53 = vadd.f32 %v360_v52, %v1576_v25  ;;  %v414_v56 = vadd.f32 %v413_v15, %v1578_v28 }
 0x144   :  { %v1639_v57 = vadd.f32 %v502_v51, %v361_v53  ;;  %v1641_v54 = vadd.f32 %v555_v14, %v414_v56  ;;  %v505_v60 = vpop.f32.mrf.mxu0  ;;  %v558_v19 = vpop.f32.mrf.mxu1 }
 0x149   :  { %v363_v55 = vpop.f32.mrf.mxu2  ;;  %v416_v20 = vpop.f32.mrf.mxu3 }
 0x14a   :  { %v417_v4 = vadd.f32 %v416_v20, %v1586_v31 }
 0x14c   :  { %v508_v61 = vpop.f32.mrf.mxu0  ;;  %v561_v0 = vpop.f32.mrf.mxu1  ;;  %v587_v41 = vadd.f32 %v558_v19, %v417_v4 }
 0x151   :  { %v366_v1 = vpop.f32.mrf.mxu2  ;;  %v419_v2 = vpop.f32.mrf.mxu3 }
 0x152   :  { %v367_v3 = vadd.f32 %v366_v1, %v1591_v34  ;;  %v420_v6 = vadd.f32 %v419_v2, %v1593_v35 }
 0x154   :  { %v588_v58 = vadd.f32 %v508_v61, %v367_v3  ;;  %v589_v25 = vadd.f32 %v561_v0, %v420_v6  ;;  %v511_v28 = vpop.f32.mrf.mxu0  ;;  %v564_v59 = vpop.f32.mrf.mxu1 }
 0x156   :  { %637 = vrot.lane.b32.xlu0 %v589_v25, %s1279_s14  ;;  %629 = vrot.lane.b32.xlu2 %v588_v58, %s1279_s14 }
 0x159   :  { %v369_v7 = vpop.f32.mrf.mxu2  ;;  %v422_v10 = vpop.f32.mrf.mxu3 }
 0x15a   :  { %v370_v11 = vadd.f32 %v369_v7, %v1595_v36  ;;  %v423_v12 = vadd.f32 %v422_v10, %v1597_v37  ;;  %v100_v36 = vld [vmem:[%s1894_s2 + $0x8] sm:$0xff]  ;;  %v364_v37 = vadd.f32 %v363_v55, %v1584_v29 }
 0x15c   :  { %v590_v13 = vadd.f32 %v511_v28, %v370_v11  ;;  %v591_v62 = vadd.f32 %v564_v59, %v423_v12  ;;  %v514_v34 = vpop.f32.mrf.mxu0  ;;  %v567_v35 = vpop.f32.mrf.mxu1  ;;  %v586_v40 = vadd.f32 %v505_v60, %v364_v37 }
 0x15e   :  { %631 = vrot.lane.b32.xlu0 %v590_v13, %s1279_s14  ;;  %639 = vrot.lane.b32.xlu1 %v591_v62, %s1279_s14 }
 0x161   :  { %v372_v63 = vpop.f32.mrf.mxu2  ;;  %v425_v17 = vpop.f32.mrf.mxu3 }
 0x162   :  { %v373_v18 = vadd.f32 %v372_v63, %v1599_v38  ;;  %v426_v21 = vadd.f32 %v425_v17, %v1601_v39  ;;  %v99_v38 = vld [vmem:[%s1894_s2] sm:$0xff]  ;;  %v678_v39 = vpop.permute.xlu2 %677 }
 0x164   :  { %v592_v22 = vadd.f32 %v514_v34, %v373_v18  ;;  %v593_v33 = vadd.f32 %v567_v35, %v426_v21 }
 0x166   :  { %641 = vrot.lane.b32.xlu0 %v593_v33, %s1279_s14  ;;  %633 = vrot.lane.b32.xlu2 %v592_v22, %s1279_s14 }
 0x167   :  { %667 = vperm.xlu1 %1163, %v100_v36  }
 0x16e   :  { %635 = vrot.lane.b32.xlu0 %v587_v41, %s1279_s14  ;;  %627 = vrot.lane.b32.xlu2 %v586_v40, %s1279_s14 }
 0x170   :  { %v605_v5 = vpop.permute.xlu2 %604 }
 0x176   :  { %662 = vperm.xlu2 %1162, %v99_v38  }
 0x180   :  { %v603_v9 = vpop.permute.xlu1 %602  ;;  %v601_v44 = vpop.permute.xlu2 %600 }
 0x181   :  { %v595_v45 = vpop.permute.xlu0 %594 }
 0x188   :  { %v597_v29 = vpop.permute.xlu1 %596  ;;  %v609_v46 = vpop.permute.xlu2 %608 }
 0x189   :  { %v612_v61 = vsel %vm610_vm9, %v597_v29, %v605_v5  ;;  %v616_v0 = vsel %vm610_vm9, %v605_v5, %v597_v29  ;;  %v618_v2 = vsel %vm610_vm9, %v609_v46, %v601_v44 }
 0x18a   :  { %v621_v28 = vadd.f32 %v616_v0, %v1627_v43  ;;  %v622_v59 = vadd.f32 %v612_v61, %v1629_v8  ;;  %v625_v11 = vadd.f32 %v618_v2, %v1639_v57  ;;  %v611_v57 = vsel %vm610_vm9, %v595_v45, %v603_v9 }
 0x190   :  { %v599_v31 = vpop.permute.xlu0 %598  ;;  %v607_v48 = vpop.permute.xlu1 %606 }
 0x191   :  { %v613_v14 = vsel %vm610_vm9, %v599_v31, %v607_v48  ;;  %v617_v52 = vsel %vm610_vm9, %v607_v48, %v599_v31 }
 0x192   :  { %v623_v53 = vadd.f32 %v617_v52, %v1633_v49  ;;  %v624_v56 = vadd.f32 %v613_v14, %v1635_v50  ;;  %v614_v50 = vsel %vm610_vm9, %v601_v44, %v609_v46  ;;  %v620_v44 = vadd.f32 %v611_v57, %v1622_v24  ;;  %v93_v52 = vld [vmem:[%s1895_s3 + $0x18] sm:$0xff] }
 0x193   :  { %v626_v12 = vadd.f32 %v614_v50, %v1641_v54  ;;  %v615_v54 = vsel %vm610_vm9, %v603_v9, %v595_v45 }
 0x194   :  { %v619_v5 = vadd.f32 %v615_v54, %v1620_v23 }
 0x1b0   :  { %v630_v47 = vpop.permute.xlu2 %629 }
 0x1c0   :  { %v634_v15 = vpop.permute.xlu2 %633 }
 0x1c8   :  { %v638_v51 = vpop.permute.xlu0 %637  ;;  %v628_v63 = vpop.permute.xlu2 %627 }
 0x1c9   :  { %v645_v3 = vsel %vm643_vm10, %v630_v47, %v638_v51  ;;  %v649_v6 = vsel %vm643_vm10, %v638_v51, %v630_v47 }
 0x1ca   :  { %v654_v13 = vadd.f32 %v645_v3, %v621_v28  ;;  %v655_v62 = vadd.f32 %v649_v6, %v622_v59 }
 0x1d0   :  { %v632_v60 = vpop.permute.xlu0 %631  ;;  %v640_v19 = vpop.permute.xlu1 %639 }
 0x1d1   :  { %v646_v55 = vsel %vm643_vm10, %v632_v60, %v640_v19  ;;  %v650_v20 = vsel %vm643_vm10, %v640_v19, %v632_v60  ;;  %v663_v23 = vpop.permute.xlu2 %662 }
 0x1d2   :  { %v656_v1 = vadd.f32 %v646_v55, %v623_v53  ;;  %v657_v49 = vadd.f32 %v650_v20, %v624_v56  ;;  %v95_v53 = vld [vmem:[%s1895_s3 + $0x28] sm:$0xff] }
 0x1d4   :  { %v684_v58 = vadd.f32 %v673_v42, %v656_v1  ;;  %v685_v25 = vadd.f32 %v673_v42, %v657_v49 }
 0x1d6   :  { %v692_v7 = vmax.f32 %v684_v58, 0.0  ;;  %v693_v10 = vmax.f32 %v685_v25, 0.0 }
 0x1d8   :  { %v642_v34 = vpop.permute.xlu0 %641  ;;  %v1179_v35 = vpack.i.bf16 %v693_v10, %v692_v7 }
 0x1d9   :  { %v647_v17 = vsel %vm643_vm10, %v634_v15, %v642_v34  ;;  %v651_v18 = vsel %vm643_vm10, %v642_v34, %v634_v15  ;;  %v668_v43 = vpop.permute.xlu1 %667  ;;  %v94_v15 = vld [vmem:[%s1895_s3 + $0x20] sm:$0xff] }
 0x1da   :  { %v658_v21 = vadd.f32 %v647_v17, %v625_v11  ;;  %v659_v8 = vadd.f32 %v651_v18, %v626_v12  ;;  %v682_v22 = vadd.f32 %v668_v43, %v654_v13  ;;  %v683_v33 = vadd.f32 %v668_v43, %v655_v62  ;;  %1180 = vrot.lane.b32.xlu0 %v1179_v35, %s1276_s29 }
 0x1db   :  { %1170 = vrot.lane.b32.xlu2 %v1179_v35, %s1274_s25 }
 0x1dc   :  { %v686_v36 = vadd.f32 %v678_v39, %v658_v21  ;;  %v687_v37 = vadd.f32 %v678_v39, %v659_v8  ;;  %v690_v4 = vmax.f32 %v682_v22, 0.0  ;;  %v691_v40 = vmax.f32 %v683_v33, 0.0 }
 0x1de   :  { %v694_v41 = vmax.f32 %v686_v36, 0.0  ;;  %v695_v38 = vmax.f32 %v687_v37, 0.0  ;;  %v1164_v42 = vpack.i.bf16 %v691_v40, %v690_v4 }
 0x1e0   :  { %1165 = vrot.lane.b32.xlu1 %v1164_v42, %s1274_s25  ;;  %v636_v29 = vpop.permute.xlu0 %635  ;;  %831 = vmatpush.msra.mxu2 %v694_v41  ;;  %v1184_v46 = vpack.i.bf16 %v695_v38, %v694_v41 }
 0x1e1   :  { %v644_v9 = vsel %vm643_vm10, %v628_v63, %v636_v29  ;;  %v648_v39 = vsel %vm643_vm10, %v636_v29, %v628_v63  ;;  %857 = vmatpush.msra.mxu3 %v695_v38 }
 0x1e2   :  { %v652_v45 = vadd.f32 %v644_v9, %v619_v5  ;;  %v653_v31 = vadd.f32 %v648_v39, %v620_v44  ;;  %1185 = vrot.lane.b32.xlu0 %v1184_v46, %s1274_s25  ;;  %832 = vmatpush.msra.mxu2 %v692_v7 }
 0x1e3   :  { %858 = vmatpush.msra.mxu3 %v693_v10  ;;  %1175 = vrot.lane.b32.xlu2 %v1164_v42, %s1276_s29 }
 0x1e4   :  { %v680_v24 = vadd.f32 %v663_v23, %v652_v45  ;;  %v681_v47 = vadd.f32 %v663_v23, %v653_v31  ;;  %833 = vmatpush.msra.mxu2 %v690_v4  ;;  %v90_v31 = vld [vmem:[%s1895_s3] sm:$0xff] }
 0x1e5   :  { %859 = vmatpush.msra.mxu3 %v691_v40 }
 0x1e6   :  { %v688_v48 = vmax.f32 %v680_v24, 0.0  ;;  %v689_v51 = vmax.f32 %v681_v47, 0.0 }
 0x1e8   :  { %1195 = vrot.lane.b32.xlu1 %v1184_v46, %s1276_s29  ;;  %834 = vmatpush.msra.mxu2 %v688_v48  ;;  %v1189_v14 = vpack.i.bf16 %v689_v51, %v688_v48 }
 0x1e9   :  { %860 = vmatpush.msra.mxu3 %v689_v51  ;;  %1114 = vmatmul.msk.f32.vlgmr.msra.gmra.mxu2 %vm809_vm11, %v93_v52 }
 0x1ea   :  { %1190 = vrot.lane.b32.xlu0 %v1189_v14, %s1274_s25  ;;  %1117 = vmatmul.msk.f32.vlgmr.msra.gmra.mxu3 %vm809_vm11, %v93_v52 }
 0x1eb   :  { %1210 = vrot.lane.b32.xlu2 %v1179_v35, %s1275_s28 }
 0x1f0   :  { %1200 = vrot.lane.b32.xlu1 %v1189_v14, %s1276_s29 }
 0x1f1   :  { %1115 = vmatmul.msk.f32.gmra.mxu2 %vm809_vm11, %v94_v15 }
 0x1f2   :  { %1215 = vrot.lane.b32.xlu0 %v1164_v42, %s1273_s24  ;;  %1118 = vmatmul.msk.f32.gmra.mxu3 %vm809_vm11, %v94_v15 }
 0x1f3   :  { %1225 = vrot.lane.b32.xlu2 %v1184_v46, %s1273_s24 }
 0x1f8   :  { %1205 = vrot.lane.b32.xlu1 %v1179_v35, %s1273_s24 }
 0x1f9   :  { %1116 = vmatmul.msk.f32.gmra.mxu2 %vm809_vm11, %v95_v53 }
 0x1fa   :  { %1235 = vrot.lane.b32.xlu0 %v1184_v46, %s1275_s28  ;;  %1119 = vmatmul.msk.f32.gmra.mxu3 %vm809_vm11, %v95_v53 }
 0x1fb   :  { %1230 = vrot.lane.b32.xlu2 %v1189_v14, %s1273_s24 }
 0x200   :  { %1220 = vrot.lane.b32.xlu1 %v1164_v42, %s1275_s28 }
 0x202   :  { %1240 = vrot.lane.b32.xlu0 %v1189_v14, %s1275_s28 }
 0x235   :  { %v1171_v56 = vpop.permute.xlu2 %1170 }
 0x236   :  { %v1173_v50 = vunpack.i.h.bf16 %v1171_v56  ;;  %v1172_v2 = vunpack.i.l.bf16 %v1171_v56 }
 0x238   :  { %v715_v43 = vsel %vm107_vm2, %v1172_v2, %v1173_v50  ;;  %v719_v21 = vsel %vm107_vm2, %v1173_v50, %v1172_v2 }
 0x23d   :  { %v1176_v19 = vpop.permute.xlu2 %1175 }
 0x23e   :  { %v1178_v7 = vunpack.i.h.bf16 %v1176_v19  ;;  %v1177_v10 = vunpack.i.l.bf16 %v1176_v19 }
 0x240   :  { %v742_v37 = vsel %vm114_vm4, %v1178_v7, %v1177_v10  ;;  %v738_v4 = vsel %vm114_vm4, %v1177_v10, %v1178_v7 }
 0x245   :  { %v1738_v6 = vpop.permute.xlu2 %1210 }
 0x246   :  { %v1213_v53 = vunpack.i.h.bf16 %v1738_v6  ;;  %v1212_v26 = vunpack.i.l.bf16 %v1738_v6 }
 0x24c   :  { %v1181_v60 = vpop.permute.xlu0 %1180 }
 0x24d   :  { %v1183_v61 = vunpack.i.h.bf16 %v1181_v60  ;;  %v1182_v0 = vunpack.i.l.bf16 %v1181_v60  ;;  %v1226_v29 = vpop.permute.xlu2 %1225 }
 0x24e   :  { %v1228_v47 = vunpack.i.h.bf16 %v1226_v29  ;;  %v1227_v48 = vunpack.i.l.bf16 %v1226_v29 }
 0x24f   :  { %v743_v12 = vsel %vm114_vm4, %v1183_v61, %v1182_v0  ;;  %v739_v13 = vsel %vm114_vm4, %v1182_v0, %v1183_v61 }
 0x250   :  { %v749_v33 = vsel %vm1387_vm3, %v715_v43, %v743_v12  ;;  %v750_v57 = vsel %vm1392_vm5, %v719_v21, %v739_v13  ;;  %v776_v19 = vsel %vm127_vm1, %v1228_v47, %v1227_v48  ;;  %v92_v21 = vld [vmem:[%s1895_s3 + $0x10] sm:$0xff] }
 0x252   :  { %v1166_v55 = vpop.permute.xlu1 %1165 }
 0x253   :  { %v1168_v58 = vunpack.i.h.bf16 %v1166_v55  ;;  %v1167_v25 = vunpack.i.l.bf16 %v1166_v55  ;;  %v772_v55 = vsel %vm127_vm1, %v1227_v48, %v1228_v47 }
 0x254   :  { %v1186_v20 = vpop.permute.xlu0 %1185 }
 0x255   :  { %v1188_v1 = vunpack.i.h.bf16 %v1186_v20  ;;  %v1187_v49 = vunpack.i.l.bf16 %v1186_v20  ;;  %v714_v8 = vsel %vm107_vm2, %v1167_v25, %v1168_v58  ;;  %v718_v22 = vsel %vm107_vm2, %v1168_v58, %v1167_v25  ;;  %v1231_v20 = vpop.permute.xlu2 %1230 }
 0x256   :  { %v747_v41 = vsel %vm1387_vm3, %v714_v8, %v742_v37  ;;  %v748_v38 = vsel %vm1392_vm5, %v718_v22, %v738_v4  ;;  %v795_v58 = vsel %vm134_vm6, %v1212_v26, %v1213_v53  ;;  %v799_v25 = vsel %vm134_vm6, %v1213_v53, %v1212_v26 }
 0x257   :  { %v716_v62 = vsel %vm107_vm2, %v1187_v49, %v1188_v1  ;;  %v720_v35 = vsel %vm107_vm2, %v1188_v1, %v1187_v49 }
 0x25a   :  { %v1196_v3 = vpop.permute.xlu1 %1195 }
 0x25b   :  { %v1198_v28 = vunpack.i.h.bf16 %v1196_v3  ;;  %v1197_v59 = vunpack.i.l.bf16 %v1196_v3 }
 0x25c   :  { %v1191_v11 = vpop.permute.xlu0 %1190 }
 0x25d   :  { %v744_v34 = vsel %vm114_vm4, %v1198_v28, %v1197_v59  ;;  %v740_v63 = vsel %vm114_vm4, %v1197_v59, %v1198_v28  ;;  %v1193_v54 = vunpack.i.h.bf16 %v1191_v11  ;;  %v1192_v36 = vunpack.i.l.bf16 %v1191_v11 }
 0x25e   :  { %v751_v17 = vsel %vm1387_vm3, %v716_v62, %v744_v34  ;;  %v752_v18 = vsel %vm1392_vm5, %v720_v35, %v740_v63  ;;  %v1233_v28 = vunpack.i.h.bf16 %v1231_v20  ;;  %v1232_v59 = vunpack.i.l.bf16 %v1231_v20 }
 0x25f   :  { %892 = vmatpush.msrb.mxu2 %v751_v17  ;;  %918 = vmatpush.msrb.mxu3 %v752_v18  ;;  %v713_v46 = vsel %vm107_vm2, %v1192_v36, %v1193_v54  ;;  %v717_v39 = vsel %vm107_vm2, %v1193_v54, %v1192_v36 }
 0x260   :  { %v769_v54 = vsel %vm127_vm1, %v1232_v59, %v1233_v28 }
 0x261   :  { %893 = vmatpush.msrb.mxu2 %v749_v33  ;;  %919 = vmatpush.msrb.mxu3 %v750_v57  ;;  %v773_v33 = vsel %vm127_vm1, %v1233_v28, %v1232_v59 }
 0x262   :  { %v1201_v40 = vpop.permute.xlu1 %1200 }
 0x263   :  { %v1203_v42 = vunpack.i.h.bf16 %v1201_v40  ;;  %v1202_v5 = vunpack.i.l.bf16 %v1201_v40  ;;  %894 = vmatpush.msrb.mxu2 %v747_v41  ;;  %920 = vmatpush.msrb.mxu3 %v748_v38  ;;  %v96_v40 = vld [vmem:[%s1895_s3 + $0x30] sm:$0xff]  ;;  %v97_v41 = vld [vmem:[%s1895_s3 + $0x38] sm:$0xff] }
 0x264   :  { %v1216_v44 = vpop.permute.xlu0 %1215 }
 0x265   :  { %v741_v9 = vsel %vm114_vm4, %v1203_v42, %v1202_v5  ;;  %v737_v45 = vsel %vm114_vm4, %v1202_v5, %v1203_v42  ;;  %v1218_v50 = vunpack.i.h.bf16 %v1216_v44  ;;  %v1217_v2 = vunpack.i.l.bf16 %v1216_v44 }
 0x266   :  { %v745_v23 = vsel %vm1387_vm3, %v713_v46, %v741_v9  ;;  %v746_v24 = vsel %vm1392_vm5, %v717_v39, %v737_v45 }
 0x267   :  { %895 = vmatpush.msrb.mxu2 %v745_v23  ;;  %921 = vmatpush.msrb.mxu3 %v746_v24  ;;  %v774_v34 = vsel %vm127_vm1, %v1218_v50, %v1217_v2  ;;  %v770_v35 = vsel %vm127_vm1, %v1217_v2, %v1218_v50 }
 0x268   :  { %1120 = vmatmul.msk.f32.vlgmr.msrb.gmra.mxu2 %vm809_vm11, %v90_v31  ;;  %1123 = vmatmul.msk.f32.vlgmr.msrb.gmra.mxu3 %vm809_vm11, %v90_v31 }
 0x26a   :  { %v1206_v51 = vpop.permute.xlu1 %1205 }
 0x26b   :  { %v1208_v14 = vunpack.i.h.bf16 %v1206_v51  ;;  %v1207_v52 = vunpack.i.l.bf16 %v1206_v51 }
 0x26c   :  { %v1236_v15 = vpop.permute.xlu0 %1235  ;;  %v836_v32 = vpop.f32.mrf.mxu2 }
 0x26d   :  { %v1238_v56 = vunpack.i.h.bf16 %v1236_v15  ;;  %v1237_v60 = vunpack.i.l.bf16 %v1236_v15  ;;  %v775_v1 = vsel %vm127_vm1, %v1208_v14, %v1207_v52  ;;  %v771_v49 = vsel %vm127_vm1, %v1207_v52, %v1208_v14  ;;  %v862_v38 = vpop.f32.mrf.mxu3 }
 0x26e   :  { %v805_v10 = vsel %vm1397_vm7, %v775_v1, %v795_v58  ;;  %v806_v11 = vsel %vm1403_vm8, %v771_v49, %v799_v25 }
 0x26f   :  { %v796_v61 = vsel %vm134_vm6, %v1237_v60, %v1238_v56  ;;  %v800_v0 = vsel %vm134_vm6, %v1238_v56, %v1237_v60  ;;  %v696_v60 = vld [vmem:[%s1896_s4] sm:$0xff]  ;;  %s1280_s4 = smov [#allocation2]  }
 0x270   :  { %1121 = vmatmul.msk.f32.gmra.mxu2 %vm809_vm11, %v91_v27  ;;  %1124 = vmatmul.msk.f32.gmra.mxu3 %vm809_vm11, %v91_v27  ;;  %v807_v3 = vsel %vm1397_vm7, %v776_v19, %v796_v61  ;;  %v808_v6 = vsel %vm1403_vm8, %v772_v55, %v800_v0  ;;  %s1031_s12 = sshll.u32 %s1280_s4, 4  ;;  %s1032_s12 = int_to_ptr.vmem [resolvable:$true] %s1031_s12 }
 0x271   :  { %953 = vmatpush.msra.mxu2 %v807_v3  ;;  %979 = vmatpush.msra.mxu3 %v808_v6 }
 0x272   :  { %v1221_v7 = vpop.permute.xlu1 %1220 }
 0x273   :  { %v1223_v12 = vunpack.i.h.bf16 %v1221_v7  ;;  %v1222_v13 = vunpack.i.l.bf16 %v1221_v7  ;;  %954 = vmatpush.msra.mxu2 %v805_v10  ;;  %980 = vmatpush.msra.mxu3 %v806_v11 }
 0x274   :  { %v1241_v62 = vpop.permute.xlu0 %1240  ;;  %v839_v42 = vpop.f32.mrf.mxu2 }
 0x275   :  { %v1243_v63 = vunpack.i.h.bf16 %v1241_v62  ;;  %v1242_v17 = vunpack.i.l.bf16 %v1241_v62  ;;  %v794_v18 = vsel %vm134_vm6, %v1222_v13, %v1223_v12  ;;  %v798_v43 = vsel %vm134_vm6, %v1223_v12, %v1222_v13  ;;  %v865_v5 = vpop.f32.mrf.mxu3 }
 0x276   :  { %v803_v8 = vsel %vm1397_vm7, %v774_v34, %v794_v18  ;;  %v804_v22 = vsel %vm1403_vm8, %v770_v35, %v798_v43  ;;  %v1245_v35 = vld [vmem:[%s1892_s0] sm:$0xff] }
 0x277   :  { %955 = vmatpush.msra.mxu2 %v803_v8  ;;  %981 = vmatpush.msra.mxu3 %v804_v22  ;;  %v793_v57 = vsel %vm134_vm6, %v1242_v17, %v1243_v63  ;;  %v797_v36 = vsel %vm134_vm6, %v1243_v63, %v1242_v17 }
 0x278   :  { %1122 = vmatmul.msk.f32.gmra.mxu2 %vm809_vm11, %v92_v21  ;;  %1125 = vmatmul.msk.f32.gmra.mxu3 %vm809_vm11, %v92_v21  ;;  %v801_v37 = vsel %vm1397_vm7, %v773_v33, %v793_v57  ;;  %v802_v4 = vsel %vm1403_vm8, %v769_v54, %v797_v36 }
 0x279   :  { %956 = vmatpush.msra.mxu2 %v801_v37  ;;  %982 = vmatpush.msra.mxu3 %v802_v4 }
 0x27c   :  { %v842_v44 = vpop.f32.mrf.mxu2 }
 0x27d   :  { %v868_v29 = vpop.f32.mrf.mxu3 }
 0x280   :  { %1126 = vmatmul.msk.f32.vlgmr.msra.gmra.mxu2 %vm809_vm11, %v96_v40  ;;  %1129 = vmatmul.msk.f32.vlgmr.msra.gmra.mxu3 %vm809_vm11, %v96_v40 }
 0x288   :  { %1127 = vmatmul.msk.f32.gmra.mxu2 %vm809_vm11, %v97_v41  ;;  %1130 = vmatmul.msk.f32.gmra.mxu3 %vm809_vm11, %v97_v41 }
 0x290   :  { %1128 = vmatmul.msk.f32.gmra.mxu2 %vm809_vm11, %v98_v30  ;;  %1131 = vmatmul.msk.f32.gmra.mxu3 %vm809_vm11, %v98_v30 }
 0x2eb   :  { %v897_v46 = vpop.f32.mrf.mxu2  ;;  %v923_v9 = vpop.f32.mrf.mxu3 }
 0x2ec   :  { %v898_v48 = vadd.f32 %v897_v46, %v836_v32  ;;  %v924_v51 = vadd.f32 %v923_v9, %v862_v38 }
 0x2f3   :  { %v900_v39 = vpop.f32.mrf.mxu2  ;;  %v926_v45 = vpop.f32.mrf.mxu3 }
 0x2f4   :  { %v901_v31 = vadd.f32 %v900_v39, %v839_v42  ;;  %v927_v23 = vadd.f32 %v926_v45, %v865_v5 }
 0x2fb   :  { %v903_v24 = vpop.f32.mrf.mxu2  ;;  %v929_v47 = vpop.f32.mrf.mxu3 }
 0x2fc   :  { %v904_v55 = vadd.f32 %v903_v24, %v842_v44  ;;  %v930_v20 = vadd.f32 %v929_v47, %v868_v29 }
 0x303   :  { %v958_v14 = vpop.f32.mrf.mxu2  ;;  %v984_v52 = vpop.f32.mrf.mxu3 }
 0x304   :  { %v993_v15 = vadd.f32 %v958_v14, %v898_v48  ;;  %v994_v53 = vadd.f32 %v984_v52, %v924_v51 }
 0x306   :  { %1001 = vrot.lane.b32.xlu2 %v994_v53, %s1278_s1  ;;  %999 = vrot.lane.b32.xlu1 %v993_v15, %s1278_s1 }
 0x30b   :  { %v961_v26 = vpop.f32.mrf.mxu2  ;;  %v987_v56 = vpop.f32.mrf.mxu3 }
 0x30c   :  { %v995_v27 = vadd.f32 %v961_v26, %v901_v31  ;;  %v996_v19 = vadd.f32 %v987_v56, %v927_v23 }
 0x30e   :  { %1017 = vperm.xlu2 %1162, %v696_v60  }
 0x313   :  { %v964_v61 = vpop.f32.mrf.mxu2  ;;  %v990_v0 = vpop.f32.mrf.mxu3 }
 0x314   :  { %v997_v1 = vadd.f32 %v964_v61, %v904_v55  ;;  %v998_v49 = vadd.f32 %v990_v0, %v930_v20 }
 0x316   :  { %1007 = vrot.lane.b32.xlu0 %v997_v1, %s1279_s14  ;;  %1009 = vrot.lane.b32.xlu1 %v998_v49, %s1279_s14  ;;  %s1033_s14 = sshll.u32 %s1897_s5, 4  ;;  %s1034_s14 = int_to_ptr.hbm [resolvable:$true] %s1033_s14 }
 0x360   :  { %v1002_v2 = vpop.permute.xlu2 %1001 }
 0x368   :  { %v1018_v13 = vpop.permute.xlu2 %1017 }
 0x378   :  { %v1000_v50 = vpop.permute.xlu1 %999 }
 0x379   :  { %v1003_v3 = vsel %vm610_vm9, %v1000_v50, %v1002_v2  ;;  %v1004_v6 = vsel %vm610_vm9, %v1002_v2, %v1000_v50 }
 0x37a   :  { %v1005_v58 = vadd.f32 %v1004_v6, %v995_v27  ;;  %v1006_v25 = vadd.f32 %v1003_v3, %v996_v19 }
 0x388   :  { %v1008_v28 = vpop.permute.xlu0 %1007  ;;  %v1010_v59 = vpop.permute.xlu1 %1009 }
 0x389   :  { %v1011_v7 = vsel %vm643_vm10, %v1008_v28, %v1010_v59  ;;  %v1012_v10 = vsel %vm643_vm10, %v1010_v59, %v1008_v28 }
 0x38a   :  { %v1013_v11 = vadd.f32 %v1011_v7, %v1005_v58  ;;  %v1014_v12 = vadd.f32 %v1012_v10, %v1006_v25 }
 0x38c   :  { %v1020_v62 = vadd.f32 %v1018_v13, %v1013_v11  ;;  %v1021_v34 = vadd.f32 %v1018_v13, %v1014_v12 }
 0x38e   :  { %v1022_v63 = vadd.f32 %v1245_v35, %v1020_v62  ;;  %v1023_v17 = vadd.f32 %v1246_v16, %v1021_v34 }
 0x390   :  { %1024 = vst [vmem:[#allocation2] sm:$0xff] %v1022_v63 }
 0x391   :  { %1025 = vst [vmem:[#allocation2 + $0x8] sm:$0xff] %v1023_v17 }
 0x392   :  { %1036 = dma.vmem_to_hbm [thread:$0]  %s1032_s12, 256, %s1034_s14, [#allocation3]  }
 0x393   :  { %1271 = dma.done.wait [#allocation3], 256  }
 0x394   :  { %1272 = vsyncadd [#allocation3], 4294967040 }
 0x395   :  { %1041 = vsyncpa [#allocation3], 1 }

</bundles_post_ra>
